<compile_context>
chip_gen: v5e
topology: v5e:2x2
jax: 0.10.0
libtpu: 0.0.40
codegen_flags: <defaults>
</compile_context>

<pallas_src>
import functools

import jax
import jax.numpy as jnp
from jax.experimental import pallas as pl
from jax.experimental.pallas import tpu as pltpu

_MIB = 1024 * 1024


def _round_up(x: int, m: int) -> int:
    return (x + m - 1) // m * m


def _cdiv(a: int, b: int) -> int:
    return (a + b - 1) // b


def _vmem_capacity_bytes() -> int:
    """Per-core VMEM capacity; conservative fallback (v7x) if unavailable."""
    try:
        info = pltpu.get_tpu_info()
        cap = getattr(info, "vmem_capacity_bytes", None)
        if cap:
            return int(cap)
    except Exception:
        pass
    return 64 * _MIB


def _vmem_limit(footprint_bytes: int, cap_bytes: int) -> int:
    """Scoped-VMEM limit: actual footprint + headroom, never the whole chip."""
    return int(min(max(footprint_bytes + 8 * _MIB, 32 * _MIB),
                   cap_bytes - 4 * _MIB))


def _select_tiling(M, N, K, in_isz, out_isz, vmem_cap):
    """Pick (tm, tn, tk).  tk is None => full-K path (no reduction grid axis)."""
    budget = int(vmem_cap * 0.70)  # leave room for Mosaic internal scratch

    tm = min(512, _round_up(M, 16))      # sublane-aligned (bf16-safe)
    tn = min(1024, _round_up(N, 128))    # lane-aligned

    def full_k_bytes(a, b):
        # 2x double-buffered x/W blocks + 2x output block + bias (f32)
        return 2 * (a + b) * K * in_isz + 2 * a * b * out_isz + 2 * b * 4

    # Prefer the full-K path: no accumulator read-modify-write, fewer grid
    # steps, simpler epilogue.  Shrink tn, then tm, before giving up on it.
    cands = [
        (tm, tn),
        (tm, max(128, _round_up(tn // 2, 128))),
        (max(16, _round_up(tm // 2, 16)), max(128, _round_up(tn // 2, 128))),
    ]
    for ctm, ctn in cands:
        if full_k_bytes(ctm, ctn) <= budget:
            return ctm, ctn, None

    # K-split path: f32 accumulator in VMEM scratch; amortize it with big tk.
    def split_bytes(a, b, c):
        return (2 * (a + b) * c * in_isz + 2 * a * b * out_isz
                + a * b * 4 + 2 * b * 4)

    tk = min(2048, _round_up(K, 128))
    while tk > 128 and split_bytes(tm, tn, tk) > budget:
        tk = max(128, _round_up(tk // 2, 128))
    while tn > 128 and split_bytes(tm, tn, tk) > budget:
        tn = max(128, _round_up(tn // 2, 128))
    while tm > 16 and split_bytes(tm, tn, tk) > budget:
        tm = max(16, _round_up(tm // 2, 16))
    return tm, tn, tk


def _full_k_kernel(x_ref, w_ref, b_ref, o_ref):
    """One (tm, tn) output tile with the whole K extent resident in VMEM.

    x_ref: (tm, K)   activations
    w_ref: (tn, K)   weight tile in PyTorch (out, in) layout
    b_ref: (1, tn)   bias (f32)
    o_ref: (tm, tn)  output tile
    """
    acc = jax.lax.dot_general(
        x_ref[...], w_ref[...],
        dimension_numbers=(((1,), (1,)), ((), ())),
        preferred_element_type=jnp.float32)
    o_ref[...] = (acc + b_ref[...]).astype(o_ref.dtype)


def _ksplit_kernel(x_ref, w_ref, b_ref, o_ref, acc_ref, *, k_total, tk):
    """One (tm, tn) output tile accumulated over the innermost K grid axis."""
    @pl.when(pl.program_id(2) == 0)
    def _init():
        acc_ref[...] = jnp.zeros_like(acc_ref)

    x = x_ref[...]
    rem = k_total % tk
    if rem != 0:
        # Mask the K tail in-register instead of padding x/W in HBM: zeros in
        # x kill the garbage contributions regardless of what W holds there.
        limit = jnp.where(pl.program_id(2) == pl.num_programs(2) - 1, rem, tk)
        col = jax.lax.broadcasted_iota(jnp.int32, x.shape, 1)
        x = jnp.where(col < limit, x, jnp.zeros_like(x))

    acc_ref[...] += jax.lax.dot_general(
        x, w_ref[...],
        dimension_numbers=(((1,), (1,)), ((), ())),
        preferred_element_type=jnp.float32)

    @pl.when(pl.program_id(2) == pl.num_programs(2) - 1)
    def _finish():
        o_ref[...] = (acc_ref[...] + b_ref[...]).astype(o_ref.dtype)


@functools.partial(jax.jit, static_argnames=("compute_dtype",))
def pure_module_forward(x, weight, bias, *, compute_dtype=jnp.bfloat16):
    """Equivalent of PureModule(nn.Linear(H_in, H_out)).forward(x).

    x:      (B, S, H_in)   float32
    weight: (H_out, H_in)  PyTorch nn.Linear layout (NOT transposed)
    bias:   (H_out,)
    compute_dtype: MXU operand dtype (default bf16); accumulation and the bias
                   epilogue are always f32.  Pass None for exact f32 operands.
    returns (B, S, H_out) in x's original dtype.
    """
    B, S, H_in = x.shape
    H_out, H_in_w = weight.shape
    assert H_in_w == H_in
    out_dtype = x.dtype
    M, N, K = B * S, H_out, H_in

    if compute_dtype is not None and x.dtype != compute_dtype:
        x = x.astype(compute_dtype)
    if compute_dtype is not None and weight.dtype != compute_dtype:
        # NOTE: if the same params are reused across calls, pre-cast the weight
        # to compute_dtype once at module init; this branch is then a no-op.
        weight = weight.astype(compute_dtype)

    x2d = x.reshape(M, K)                               # no padding, no copies
    b2d = bias.astype(jnp.float32).reshape(1, N)

    in_isz = jnp.dtype(x2d.dtype).itemsize
    out_isz = jnp.dtype(out_dtype).itemsize
    vmem_cap = _vmem_capacity_bytes()
    tm, tn, tk = _select_tiling(M, N, K, in_isz, out_isz, vmem_cap)

    gm, gn = _cdiv(M, tm), _cdiv(N, tn)
    # TODO(synk): for v7x dual-TC, if both parallel axes collapse to one tile
    # on a large problem, shrink tm so both cores get work.

    # Real traffic: W is re-streamed once per M tile, x once per N tile.
    cost = pl.CostEstimate(
        flops=2 * M * N * K,
        transcendentals=0,
        bytes_accessed=(gn * M * K * in_isz
                        + gm * N * K * in_isz
                        + gm * N * 4
                        + M * N * out_isz))

    if tk is None:
        # ---- full-K path: single MXU pass per (i, j) tile, bias fused ----
        footprint = 2 * (tm + tn) * K * in_isz + 2 * tm * tn * out_isz + 2 * tn * 4
        out2d = pl.pallas_call(
            _full_k_kernel,
            out_shape=jax.ShapeDtypeStruct((M, N), out_dtype),
            grid_spec=pltpu.PrefetchScalarGridSpec(
                num_scalar_prefetch=0,
                grid=(gm, gn),
                in_specs=[
                    pl.BlockSpec((tm, K), lambda i, j: (i, 0)),   # activations
                    pl.BlockSpec((tn, K), lambda i, j: (j, 0)),   # weight (out,in)
                    pl.BlockSpec((1, tn), lambda i, j: (0, j)),   # bias
                ],
                out_specs=pl.BlockSpec((tm, tn), lambda i, j: (i, j)),
            ),
            compiler_params=pltpu.CompilerParams(
                dimension_semantics=("parallel", "parallel"),
                vmem_limit_bytes=_vmem_limit(footprint, vmem_cap)),
            cost_estimate=cost,
        )(x2d, weight, b2d)
    else:
        # ---- K-split path: innermost "arbitrary" K axis, f32 accumulator ----
        gk = _cdiv(K, tk)
        footprint = (2 * (tm + tn) * tk * in_isz + 2 * tm * tn * out_isz
                     + tm * tn * 4 + 2 * tn * 4)
        kernel = functools.partial(_ksplit_kernel, k_total=K, tk=tk)
        out2d = pl.pallas_call(
            kernel,
            out_shape=jax.ShapeDtypeStruct((M, N), out_dtype),
            grid_spec=pltpu.PrefetchScalarGridSpec(
                num_scalar_prefetch=0,
                grid=(gm, gn, gk),
                in_specs=[
                    pl.BlockSpec((tm, tk), lambda i, j, k: (i, k)),  # activations
                    pl.BlockSpec((tn, tk), lambda i, j, k: (j, k)),  # weight (out,in)
                    pl.BlockSpec((1, tn), lambda i, j, k: (0, j)),   # bias
                ],
                out_specs=pl.BlockSpec((tm, tn), lambda i, j, k: (i, j)),
                scratch_shapes=[pltpu.VMEM((tm, tn), jnp.float32)],
            ),
            compiler_params=pltpu.CompilerParams(
                dimension_semantics=("parallel", "parallel", "arbitrary"),
                vmem_limit_bytes=_vmem_limit(footprint, vmem_cap)),
            cost_estimate=cost,
        )(x2d, weight, b2d)

    return out2d.reshape(B, S, N)


if __name__ == "__main__":
    # Deterministic "module parameters" (shapes per nn.Linear(hidden, hidden)).
    B, S, H = 2, 8, 32
    key = jax.random.PRNGKey(0)
    kx, kw, kb = jax.random.split(key, 3)

    x = jax.random.normal(kx, (B, S, H), dtype=jnp.float32)
    # mimic PyTorch's uniform(-1/sqrt(fan_in), 1/sqrt(fan_in)) init, deterministically
    bound = 1.0 / (H ** 0.5)
    weight = jax.random.uniform(kw, (H, H), minval=-bound, maxval=bound,
                                dtype=jnp.float32)
    bias = jax.random.uniform(kb, (H,), minval=-bound, maxval=bound,
                              dtype=jnp.float32)

    # Pure-JAX reference of the functional forward.
    ref = x @ weight.T + bias

    # Default path: bf16 MXU operands, f32 accumulate + f32 bias epilogue.
    out = jax.block_until_ready(pure_module_forward(x, weight, bias))
    assert out.shape == (B, S, H)
    assert jnp.allclose(out, ref, atol=2e-2, rtol=2e-2)

    # Exact-f32-operand path (bit-for-bit semantics of the wrapped f32 Linear).
    out_f32 = jax.block_until_ready(
        pure_module_forward(x, weight, bias, compute_dtype=None))
    assert out_f32.shape == (B, S, H)
    assert jnp.allclose(out_f32, ref, atol=1e-4, rtol=1e-4)

    # TODO(synk): PureModule's retracing-cache / autograd-via-jax.vjp machinery
    # is framework plumbing with no Pallas equivalent; only the wrapped
    # module's functional forward compute is implemented as a kernel.
    print("KERNEL_OK")
</pallas_src>

<mosaic_0001>
module attributes {stable_mosaic.version = 11 : i64} {
  func.func @_full_k_kernel(%arg0: i32, %arg1: i32, %arg2: memref<16x32xbf16, #tpu.memory_space<vmem>>, %arg3: memref<128x32xbf16, #tpu.memory_space<vmem>>, %arg4: memref<1x128xf32, #tpu.memory_space<vmem>>, %arg5: memref<16x128xf32, #tpu.memory_space<vmem>>) attributes {dimension_semantics = [#tpu.dimension_semantics<parallel>, #tpu.dimension_semantics<parallel>], iteration_bounds = array<i64: 1, 1>, scalar_prefetch = 0 : i64, scratch_operands = 0 : i64, tpu.core_type = #tpu.core_type<tc>, window_params = [{transform_indices = @transform_0, window_bounds = array<i64: 16, 32>}, {transform_indices = @transform_1, window_bounds = array<i64: 128, 32>}, {transform_indices = @transform_2, window_bounds = array<i64: 1, 128>}, {transform_indices = @transform_3, window_bounds = array<i64: 16, 128>}]} {
    %c0 = arith.constant 0 : index
    %c0_0 = arith.constant 0 : index
    %0 = vector.load %arg2[%c0, %c0_0] : memref<16x32xbf16, #tpu.memory_space<vmem>>, vector<16x32xbf16>
    %c0_1 = arith.constant 0 : index
    %c0_2 = arith.constant 0 : index
    %1 = vector.load %arg3[%c0_1, %c0_2] : memref<128x32xbf16, #tpu.memory_space<vmem>>, vector<128x32xbf16>
    %cst = arith.constant dense<0.000000e+00> : vector<16x128xf32>
    %2 = tpu.matmul %0, %1, %cst {dimension_numbers = #tpu.dot_dimension_numbers<[1], [1], [0], [0], [0, 0, 1, 0], [], []>} : vector<16x32xbf16>, vector<128x32xbf16>, vector<16x128xf32> -> vector<16x128xf32>
    %c0_3 = arith.constant 0 : index
    %c0_4 = arith.constant 0 : index
    %3 = vector.load %arg4[%c0_3, %c0_4] : memref<1x128xf32, #tpu.memory_space<vmem>>, vector<1x128xf32>
    %4 = vector.broadcast %3 : vector<1x128xf32> to vector<16x128xf32>
    %5 = arith.addf %2, %4 : vector<16x128xf32>
    %c0_5 = arith.constant 0 : index
    %c0_6 = arith.constant 0 : index
    %6 = vector.load %arg5[%c0_5, %c0_6] : memref<16x128xf32, #tpu.memory_space<vmem>>, vector<16x128xf32>
    tpu.vector_store %arg5[%c0_5, %c0_6], %5 {strides = array<i32>} : memref<16x128xf32, #tpu.memory_space<vmem>>, vector<16x128xf32>,
    return
  }
  func.func @transform_0(%arg0: i32, %arg1: i32) -> (i32, i32) {
    %c0_i32 = arith.constant 0 : i32
    %c0_i32_0 = arith.constant 0 : i32
    return %arg0, %c0_i32 : i32, i32
  }
  func.func @transform_1(%arg0: i32, %arg1: i32) -> (i32, i32) {
    %c0_i32 = arith.constant 0 : i32
    %c0_i32_0 = arith.constant 0 : i32
    return %arg1, %c0_i32 : i32, i32
  }
  func.func @transform_2(%arg0: i32, %arg1: i32) -> (i32, i32) {
    %c0_i32 = arith.constant 0 : i32
    %c0_i32_0 = arith.constant 0 : i32
    return %c0_i32, %arg1 : i32, i32
  }
  func.func @transform_3(%arg0: i32, %arg1: i32) -> (i32, i32) {
    %c0_i32 = arith.constant 0 : i32
    return %arg0, %arg1 : i32, i32
  }
}

</mosaic_0001>

<bundles_post_ra>
// kernel: pure_module_forward.1
= control target key start
LH: loop header
LB: loop body
LE: loop exit
PB: predicated region body
PF: predicated region fallthrough
CT: control target
= control target key end

     0   :  { %vm82_vm0 = vcmask 261120   ;;  %s285_s0 = inlined_call_operand.vmem [shape: bf16[16,32], index: 0, kind: input, shape index: {}]   ;;  %s286_s1 = inlined_call_operand.vmem [shape: bf16[32,32], index: 1, kind: input, shape index: {}]   ;;  %s287_s2 = inlined_call_operand.vmem [shape: f32[1,32], index: 2, kind: input, shape index: {}]   ;;  %s288_s3 = inlined_call_operand.hbm [shape: f32[16,32], index: 3, kind: output, shape index: {}]  }
   0x1   :  { %v189_v0 = vld [vmem:[%s286_s1 + $0x38] sm:$0xff] }
   0x2   :  { %v108_v1 = vsel %vm82_vm0, %v189_v0, 0 }
   0x3   :  { %8 = vsyncpa [#allocation3], 0  ;;  %110 = vmatpush.bf16.xpose.msra.mxu0 %v108_v1  ;;  %v188_v2 = vld [vmem:[%s286_s1 + $0x30] sm:$0xff]  ;;  %v187_v4 = vld [vmem:[%s286_s1 + $0x28] sm:$0xff]  ;;  %s220_s5 = smov [#allocation2]   ;;  %s132_s8 = sshll.u32 %s288_s3, 4  ;;  %s133_s8 = int_to_ptr.hbm [resolvable:$true] %s132_s8 }
   0x4   :  { %v105_v3 = vsel %vm82_vm0, %v188_v2, 0  ;;  %v102_v5 = vsel %vm82_vm0, %v187_v4, 0  ;;  %v186_v6 = vld [vmem:[%s286_s1 + $0x20] sm:$0xff]  ;;  %v185_v8 = vld [vmem:[%s286_s1 + $0x18] sm:$0xff]  ;;  %v184_v10 = vld [vmem:[%s286_s1 + $0x10] sm:$0xff]  ;;  %s130_s6 = sshll.u32 %s220_s5, 4  ;;  %s131_s6 = int_to_ptr.vmem [resolvable:$true] %s130_s6 }
   0x5   :  { %v99_v7 = vsel %vm82_vm0, %v186_v6, 0  ;;  %v96_v9 = vsel %vm82_vm0, %v185_v8, 0  ;;  %v93_v11 = vsel %vm82_vm0, %v184_v10, 0  ;;  %v183_v12 = vld [vmem:[%s286_s1 + $0x8] sm:$0xff]  ;;  %v182_v14 = vld [vmem:[%s286_s1] sm:$0xff]  ;;  %s222_s9 = smov 8  }
   0x6   :  { %v90_v13 = vsel %vm82_vm0, %v183_v12, 0  ;;  %v87_v15 = vsel %vm82_vm0, %v182_v14, 0  ;;  %v181_v16 = vld [vmem:[%s285_s0] sm:$0xff]  ;;  %s221_s0 = smov 128  }
   0x7   :  { %v193_v17 = vld [vmem:[%s287_s2] ss:$0 sm:$0xff] }
   0xb   :  { %111 = vmatpush.bf16.xpose.msra.mxu0 %v105_v3 }
  0x13   :  { %112 = vmatpush.bf16.xpose.msra.mxu0 %v102_v5 }
  0x1b   :  { %113 = vmatpush.bf16.xpose.msra.mxu0 %v99_v7 }
  0x23   :  { %114 = vmatpush.bf16.xpose.msra.mxu0 %v96_v9 }
  0x2b   :  { %115 = vmatpush.bf16.xpose.msra.mxu0 %v93_v11 }
  0x33   :  { %116 = vmatpush.bf16.xpose.msra.mxu0 %v90_v13 }
  0x3b   :  { %117 = vmatpush.bf16.xpose.msra.mxu0 %v87_v15 }
  0x42   :  { %180 = vmatmul.msk.bf16.vlgmr.msra.gmra.mxu0 %vm82_vm0, %v181_v16 }
  0xbf   :  { %v119_v18 = vpop.f32.mrf.mxu0 }
  0xc0   :  { %v120_v19 = vadd.f32 %v193_v17, %v119_v18 }
  0xc2   :  { %124 = vst [vmem:[#allocation2] sm:$0xff] %v120_v19 }
  0xc7   :  { %v121_v20 = vpop.f32.mrf.mxu0 }
  0xc8   :  { %v122_v21 = vadd.f32 %v193_v17, %v121_v20 }
  0xca   :  { %125 = vst [vmem:[#allocation2 + $0x8] sm:$0xff] %v122_v21 }
  0xcb   :  { %138 = dma.vmem_to_hbm [thread:$0]  %s131_s6, 256, %s133_s8, [#allocation3], %s221_s0, %s221_s0, %s222_s9  }
  0xcc   :  { %218 = dma.done.wait [#allocation3], 256  }
  0xcd   :  { %219 = vsyncadd [#allocation3], 4294967040 }
  0xce   :  { %143 = vsyncpa [#allocation3], 1 }

</bundles_post_ra>
